<compile_context>
chip_gen: v6e
topology: v6e:2x2x1
jax: 0.10.0
libtpu: 0.0.40
codegen_flags: <defaults>
</compile_context>

<pallas_src>
import functools

import jax
import jax.numpy as jnp
from jax.experimental import pallas as pl
from jax.experimental.pallas import tpu as pltpu


def _round_up(x, m):
    return ((x + m - 1) // m) * m


# ----------------------------------------------------------------------------
# Pallas kernel: one batch tile of the full MLP forward (layer1 -> leaky_relu
# -> h2o). Batch is on the lane axis; weights are resident across grid steps.
# ----------------------------------------------------------------------------
def _mlff_kernel(x_ref, w1_ref, b1_ref, w2_ref, b2_ref, o_ref):
    x = x_ref[...]        # (d_in, TB)       batch on lanes
    w1 = w1_ref[...]      # (hidden, d_in)   resident block
    b1 = b1_ref[...]      # (hidden, 1)
    w2 = w2_ref[...]      # (d_out, hidden)  resident block
    b2 = b2_ref[...]      # (d_out, 1)

    # Layer 1 on the MXU: (hidden, d_in) @ (d_in, TB) -> (hidden, TB)
    h = jnp.dot(w1, x, preferred_element_type=jnp.float32) + b1

    # F.leaky_relu, negative_slope = 0.01 (mul + max, numerically identical
    # to where(h >= 0, h, 0.01*h) for this slope).
    h = jnp.maximum(h, 0.01 * h)

    # Layer 2 (h2o) on the MXU: (d_out, hidden) @ (hidden, TB) -> (d_out, TB)
    o_ref[...] = jnp.dot(w2, h, preferred_element_type=jnp.float32) + b2


# ----------------------------------------------------------------------------
# Wrapper: layout plumbing (transpose so batch is lane-minor), batch tiling,
# padding, and the pallas_call.  Jitted so the plumbing fuses with the call.
# ----------------------------------------------------------------------------
@functools.partial(jax.jit, static_argnames=("tb_max",))
def mlff_forward(x, w1, b1, w2, b2, *, tb_max=65536):
    """x: (B, d_in); w1: (H, d_in); b1: (H,); w2: (d_out, H); b2: (d_out,)."""
    B, d_in = x.shape
    hidden = w1.shape[0]
    d_out = w2.shape[0]

    # Batch tile (lane axis): multiple of 128.  Aim for >= 2 tiles when the
    # batch is large enough (so ("parallel",) can shard across both v7x cores),
    # and cap at tb_max so per-step compute amortises the ~600-cycle step cost
    # without blowing the VMEM budget.
    tb = max(128, min(tb_max, _round_up(pl.cdiv(max(B, 1), 2), 128)))
    b_pad = _round_up(max(B, 1), tb)
    num_tiles = b_pad // tb

    # Transpose so batch maps to lanes; pad batch up to a tile multiple.
    # (Fused under the same jit as the pallas_call.)
    x_t = jnp.transpose(x.astype(jnp.float32))              # (d_in, B)
    x_t = jnp.pad(x_t, ((0, 0), (0, b_pad - B)))            # (d_in, b_pad)

    w1f = w1.astype(jnp.float32)                             # (hidden, d_in)
    b1c = b1.astype(jnp.float32).reshape(hidden, 1)          # (hidden, 1)
    w2f = w2.astype(jnp.float32)                             # (d_out, hidden)
    b2c = b2.astype(jnp.float32).reshape(d_out, 1)           # (d_out, 1)

    # VMEM budget from the actual sublane-padded tile footprint at this TB:
    # double-buffered x/out streams + (hidden, TB) intermediate with headroom
    # for activation temporaries.  Clamp to 48 MiB (v7x has 64 MiB physical).
    sub = 8
    x_tile_bytes = _round_up(d_in, sub) * tb * 4
    out_tile_bytes = _round_up(d_out, sub) * tb * 4
    h_bytes = _round_up(hidden, sub) * tb * 4
    vmem_limit = 2 * 2 * (x_tile_bytes + out_tile_bytes) + 3 * h_bytes
    vmem_limit = min(max(vmem_limit, 8 << 20), 48 << 20)

    out_t = pl.pallas_call(
        _mlff_kernel,
        out_shape=jax.ShapeDtypeStruct((d_out, b_pad), jnp.float32),
        grid=(num_tiles,),
        in_specs=[
            pl.BlockSpec((d_in, tb), lambda i: (0, i)),        # streamed input
            pl.BlockSpec((hidden, d_in), lambda i: (0, 0)),    # resident weights
            pl.BlockSpec((hidden, 1), lambda i: (0, 0)),
            pl.BlockSpec((d_out, hidden), lambda i: (0, 0)),
            pl.BlockSpec((d_out, 1), lambda i: (0, 0)),
        ],
        out_specs=pl.BlockSpec((d_out, tb), lambda i: (0, i)), # lane-dense output
        compiler_params=pltpu.CompilerParams(
            dimension_semantics=("parallel",),                 # megacore on v7x
            vmem_limit_bytes=vmem_limit,
        ),
    )(x_t, w1f, b1c, w2f, b2c)

    # Drop batch padding, back to (B, d_out).  Avoid an HBM transpose when
    # d_out == 1 (the common case for this module).
    if d_out == 1:
        return out_t[0, :B].reshape(B, 1)
    return jnp.transpose(out_t[:, :B])


def mlff_eval_seq(seq, w1, b1, w2, b2):
    """Equivalent of MLFF.eval_seq: seq is (num_batch, traj_len, dim)."""
    nb, tl, dim = seq.shape
    flat = seq.reshape(nb * tl, dim)
    out = mlff_forward(flat, w1, b1, w2, b2)
    return out.reshape(nb, tl, -1)


# TODO(synk): bn=True path (nn.BatchNorm1d after each hidden layer) not
# implemented; the reference default is bn=False, which this kernel matches.


# ----------------------------------------------------------------------------
# Deterministic parameter init (mimics nn.Linear default: U(-1/sqrt(fan_in), +))
# ----------------------------------------------------------------------------
def init_params(key, input_size=2, hidden=20, output_size=1):
    k1, k2, k3, k4 = jax.random.split(key, 4)
    bound1 = 1.0 / jnp.sqrt(input_size)
    bound2 = 1.0 / jnp.sqrt(hidden)
    w1 = jax.random.uniform(k1, (hidden, input_size), jnp.float32, -bound1, bound1)
    b1 = jax.random.uniform(k2, (hidden,), jnp.float32, -bound1, bound1)
    w2 = jax.random.uniform(k3, (output_size, hidden), jnp.float32, -bound2, bound2)
    b2 = jax.random.uniform(k4, (output_size,), jnp.float32, -bound2, bound2)
    return w1, b1, w2, b2


def _ref_forward(x, w1, b1, w2, b2):
    h = x @ w1.T + b1
    h = jnp.where(h >= 0, h, 0.01 * h)
    return h @ w2.T + b2


if __name__ == "__main__":
    key = jax.random.PRNGKey(0)
    kx, ks, kb, kp = jax.random.split(key, 4)

    batch, input_size, hidden, output_size = 8, 2, 20, 1
    x = jax.random.normal(kx, (batch, input_size), jnp.float32)
    w1, b1, w2, b2 = init_params(kp, input_size, hidden, output_size)

    # Forward pass through the Pallas kernel.
    y = mlff_forward(x, w1, b1, w2, b2)
    y = jax.block_until_ready(y)

    # Pure-JAX reference check.
    y_ref = _ref_forward(x, w1, b1, w2, b2)
    assert y.shape == (batch, output_size)
    assert jnp.allclose(y, y_ref, atol=1e-5), "mismatch vs reference (forward)"

    # A slightly larger, non-multiple-of-128 batch to exercise tiling/padding.
    xb = jax.random.normal(kb, (300, input_size), jnp.float32)
    yb = jax.block_until_ready(mlff_forward(xb, w1, b1, w2, b2))
    yb_ref = _ref_forward(xb, w1, b1, w2, b2)
    assert yb.shape == (300, output_size)
    assert jnp.allclose(yb, yb_ref, atol=1e-5), "mismatch vs reference (tiled batch)"

    # eval_seq equivalent on a small trajectory batch.
    seq = jax.random.normal(ks, (2, 4, input_size), jnp.float32)
    y_seq = jax.block_until_ready(mlff_eval_seq(seq, w1, b1, w2, b2))
    y_seq_ref = _ref_forward(seq.reshape(-1, input_size), w1, b1, w2, b2).reshape(2, 4, -1)
    assert y_seq.shape == (2, 4, output_size)
    assert jnp.allclose(y_seq, y_seq_ref, atol=1e-5), "mismatch vs reference (eval_seq)"

    print("KERNEL_OK")
</pallas_src>

<mosaic_0001>
module attributes {stable_mosaic.version = 11 : i64} {
  func.func @_mlff_kernel(%arg0: i32, %arg1: memref<2x128xf32, #tpu.memory_space<vmem>>, %arg2: memref<20x2xf32, #tpu.memory_space<vmem>>, %arg3: memref<20x1xf32, #tpu.memory_space<vmem>>, %arg4: memref<1x20xf32, #tpu.memory_space<vmem>>, %arg5: memref<1x1xf32, #tpu.memory_space<vmem>>, %arg6: memref<1x128xf32, #tpu.memory_space<vmem>>) attributes {dimension_semantics = [#tpu.dimension_semantics<parallel>], iteration_bounds = array<i64: 1>, scalar_prefetch = 0 : i64, scratch_operands = 0 : i64, tpu.core_type = #tpu.core_type<tc>, window_params = [{transform_indices = @transform_0, window_bounds = array<i64: 2, 128>}, {pipeline_mode = #tpu.pipeline_mode<synchronous>, transform_indices = @transform_1, window_bounds = array<i64: 20, 2>}, {pipeline_mode = #tpu.pipeline_mode<synchronous>, transform_indices = @transform_2, window_bounds = array<i64: 20, 1>}, {pipeline_mode = #tpu.pipeline_mode<synchronous>, transform_indices = @transform_3, window_bounds = array<i64: 1, 20>}, {pipeline_mode = #tpu.pipeline_mode<synchronous>, transform_indices = @transform_4, window_bounds = array<i64: 1, 1>}, {transform_indices = @transform_5, window_bounds = array<i64: 1, 128>}]} {
    %c0 = arith.constant 0 : index
    %c0_0 = arith.constant 0 : index
    %0 = vector.load %arg1[%c0, %c0_0] : memref<2x128xf32, #tpu.memory_space<vmem>>, vector<2x128xf32>
    %c0_1 = arith.constant 0 : index
    %c0_2 = arith.constant 0 : index
    %1 = vector.load %arg2[%c0_1, %c0_2] : memref<20x2xf32, #tpu.memory_space<vmem>>, vector<20x2xf32>
    %c0_3 = arith.constant 0 : index
    %c0_4 = arith.constant 0 : index
    %2 = vector.load %arg3[%c0_3, %c0_4] : memref<20x1xf32, #tpu.memory_space<vmem>>, vector<20x1xf32>
    %c0_5 = arith.constant 0 : index
    %c0_6 = arith.constant 0 : index
    %3 = vector.load %arg4[%c0_5, %c0_6] : memref<1x20xf32, #tpu.memory_space<vmem>>, vector<1x20xf32>
    %c0_7 = arith.constant 0 : index
    %c0_8 = arith.constant 0 : index
    %4 = vector.load %arg5[%c0_7, %c0_8] : memref<1x1xf32, #tpu.memory_space<vmem>>, vector<1x1xf32>
    %cst = arith.constant dense<0.000000e+00> : vector<20x128xf32>
    %5 = tpu.matmul %1, %0, %cst {dimension_numbers = #tpu.dot_dimension_numbers<[1], [0], [0], [1], [0, 0, 1, 1], [], []>} : vector<20x2xf32>, vector<2x128xf32>, vector<20x128xf32> -> vector<20x128xf32>
    %6 = vector.broadcast %2 : vector<20x1xf32> to vector<20x128xf32>
    %7 = arith.addf %5, %6 : vector<20x128xf32>
    %cst_9 = arith.constant 0.00999999977 : f32
    %8 = vector.broadcast %cst_9 : f32 to vector<20x128xf32>
    %9 = arith.mulf %8, %7 : vector<20x128xf32>
    %10 = arith.maximumf %7, %9 : vector<20x128xf32>
    %cst_10 = arith.constant dense<0.000000e+00> : vector<1x128xf32>
    %11 = tpu.matmul %3, %10, %cst_10 {dimension_numbers = #tpu.dot_dimension_numbers<[1], [0], [0], [1], [0, 0, 1, 1], [], []>} : vector<1x20xf32>, vector<20x128xf32>, vector<1x128xf32> -> vector<1x128xf32>
    %12 = vector.broadcast %4 : vector<1x1xf32> to vector<1x128xf32>
    %13 = arith.addf %11, %12 : vector<1x128xf32>
    %c0_11 = arith.constant 0 : index
    %c0_12 = arith.constant 0 : index
    %14 = vector.load %arg6[%c0_11, %c0_12] : memref<1x128xf32, #tpu.memory_space<vmem>>, vector<1x128xf32>
    tpu.vector_store %arg6[%c0_11, %c0_12], %13 {strides = array<i32>} : memref<1x128xf32, #tpu.memory_space<vmem>>, vector<1x128xf32>,
    return
  }
  func.func @transform_0(%arg0: i32) -> (i32, i32) {
    %c0_i32 = arith.constant 0 : i32
    %c0_i32_0 = arith.constant 0 : i32
    return %c0_i32, %arg0 : i32, i32
  }
  func.func @transform_1(%arg0: i32) -> (i32, i32) {
    %c0_i32 = arith.constant 0 : i32
    %c0_i32_0 = arith.constant 0 : i32
    %c0_i32_1 = arith.constant 0 : i32
    return %c0_i32, %c0_i32_0 : i32, i32
  }
  func.func @transform_2(%arg0: i32) -> (i32, i32) {
    %c0_i32 = arith.constant 0 : i32
    %c0_i32_0 = arith.constant 0 : i32
    %c0_i32_1 = arith.constant 0 : i32
    return %c0_i32, %c0_i32_0 : i32, i32
  }
  func.func @transform_3(%arg0: i32) -> (i32, i32) {
    %c0_i32 = arith.constant 0 : i32
    %c0_i32_0 = arith.constant 0 : i32
    %c0_i32_1 = arith.constant 0 : i32
    return %c0_i32, %c0_i32_0 : i32, i32
  }
  func.func @transform_4(%arg0: i32) -> (i32, i32) {
    %c0_i32 = arith.constant 0 : i32
    %c0_i32_0 = arith.constant 0 : i32
    %c0_i32_1 = arith.constant 0 : i32
    return %c0_i32, %c0_i32_0 : i32, i32
  }
  func.func @transform_5(%arg0: i32) -> (i32, i32) {
    %c0_i32 = arith.constant 0 : i32
    %c0_i32_0 = arith.constant 0 : i32
    return %c0_i32, %arg0 : i32, i32
  }
}

</mosaic_0001>

<bundles_post_ra>
// kernel: mlff_forward.1
= control target key start
LH: loop header
LB: loop body
LE: loop exit
PB: predicated region body
PF: predicated region fallthrough
CT: control target
= control target key end

     0   :  { %vm56_vm0 = vcmask 1041408   ;;  %vm46_vm1 = vcmask 15360   ;;  %v277_v0 = vmov 0.0   ;;  %vm278_vm2 = vmmov 0   ;;  %s347_s0 = inlined_call_operand.vmem [shape: f32[2,128], index: 0, kind: input, shape index: {}]   ;;  %s348_s1 = inlined_call_operand.vmem [shape: f32[20,2], index: 1, kind: input, shape index: {}]   ;;  %s349_s2 = inlined_call_operand.vmem [shape: f32[20,1], index: 2, kind: input, shape index: {}]   ;;  %s350_s4 = inlined_call_operand.<no memory space> [shape: f32[1,1], index: 4, kind: input, shape index: {}]   ;;  %s351_s3 = inlined_call_operand.vmem [shape: f32[1,20], index: 3, kind: input, shape index: {}]   ;;  %s352_s5 = inlined_call_operand.vmem [shape: f32[1,128], index: 5, kind: output, shape index: {}]  }
   0x1   :  { %252 = vmatprep.subr.mxu0 %v277_v0  ;;  %v22_v1 = vld [vmem:[%s347_s0] sm:$0x3]  ;;  %254 = vmatprep.mubr.msk.f32.mxu0 %vm278_vm2, %v277_v0  ;;  %v10_v3 = vstv %s350_s4  ;;  %v279_v4 = vmov 0   ;;  %v28_v5 = vld [vmem:[%s349_s2 + $0x10] sm:$0xf]  ;;  %v24_v7 = vld [vmem:[%s348_s1 + $0x8] sm:$0xff]  ;;  %v151_v30 = vlaneseq }
   0x2   :  { %v23_v2 = vld [vmem:[%s348_s1] sm:$0xff]  ;;  %253 = vmatpush3.msk.msra.mxu0 %vm56_vm0, %v22_v1  ;;  %276 = vset.pattern.permute.xlu1 %v279_v4  ;;  %11 = vst [vmem:[#allocation2] sm:$0x1] %v10_v3  ;;  %v27_v8 = vld [vmem:[%s349_s2 + $0x8] sm:$0xff]  ;;  %v25_v9 = vld [vmem:[%s348_s1 + $0x10] sm:$0xf] }
   0x3   :  { %v26_v6 = vld [vmem:[%s349_s2] sm:$0xff]  ;;  %255 = vmatmul.mubr.msk.f32.vlgmr.msra.gmra.mxu0 %vm46_vm1, %v23_v2  ;;  %275 = vset.pattern.permute.xlu0 %v279_v4  ;;  %vm159_vm3 = vcmask 1043456   ;;  %vm155_vm4 = vcmask 162816   ;;  %v152_v31 = vshrl.u32 %v151_v30, 7 }
   0x4   :  { %257 = vmatprep.mubr.msk.f32.mxu0 %vm278_vm2, %v277_v0  ;;  %43 = vperm.xlu0 %275, %v28_v5   ;;  %v29_v29 = vld [vmem:[%s351_s3] sm:$0x1] }
   0x5   :  { %33 = vperm.xlu1 %276, %v26_v6   ;;  %263 = vmatprep.subr.mxu1 %v277_v0  ;;  %v153_v32 = vsub.s32 0, %v152_v31 }
   0x6   :  { %269 = vmatprep.mubr.msk.f32.mxu1 %vm278_vm2, %v277_v0 }
   0x7   :  { %258 = vmatmul.mubr.msk.f32.gmra.mxu0 %vm46_vm1, %v24_v7 }
   0x8   :  { %260 = vmatprep.mubr.msk.f32.mxu0 %vm278_vm2, %v277_v0  ;;  %38 = vperm.xlu0 %275, %v27_v8  }
   0x9   :  { %v30_v10 = vld [vmem:[#allocation2] sm:$0x1] }
   0xa   :  { %148 = vperm.xlu1 %276, %v30_v10  }
   0xb   :  { %261 = vmatmul.mubr.msk.f32.gmra.mxu0 %vm46_vm1, %v25_v9 }
  0x7f   :  { %v44_v11 = vpop.permute.xlu0 %43 }
  0x80   :  { %v34_v16 = vpop.permute.xlu1 %33 }
  0x83   :  { %v39_v14 = vpop.permute.xlu0 %38 }
  0x85   :  { %v149_v33 = vpop.permute.xlu1 %148 }
  0x86   :  { %v154_v34 = vrot.slane %v149_v33, %v153_v32 }
  0xc3   :  { %v126_v12 = vpop.f32.mrf.mxu0 }
  0xc4   :  { %v127_v20 = vadd.f32 %v126_v12, %v34_v16 }
  0xc5   :  { %v256_v13 = vpop.f32.mrf.mxu0 }
  0xc6   :  { %v140_v25 = vmul.f32 0.01, %v127_v20 }
  0xc7   :  { %v131_v15 = vpop.f32.mrf.mxu0 }
  0xc8   :  { %v132_v18 = vadd.f32 %v131_v15, %v39_v14  ;;  %v143_v28 = vmax.f32 %v127_v20, %v140_v25 }
  0xc9   :  { %v259_v17 = vpop.f32.mrf.mxu0 }
  0xca   :  { %v141_v23 = vmul.f32 0.01, %v132_v18 }
  0xcb   :  { %v136_v19 = vpop.f32.mrf.mxu0 }
  0xcc   :  { %v137_v21 = vadd.f32 %v136_v19, %v44_v11  ;;  %v144_v27 = vmax.f32 %v132_v18, %v141_v23 }
  0xcd   :  { %v262_v22 = vpop.f32.mrf.mxu0 }
  0xce   :  { %v142_v24 = vmul.f32 0.01, %v137_v21 }
  0xd0   :  { %v145_v26 = vmax.f32 %v137_v21, %v142_v24 }
  0xd2   :  { %264 = vmatpush3.msk.msra.mxu1 %vm159_vm3, %v145_v26 }
  0xd3   :  { %265 = vmatprep.subr.mxu1 %v277_v0 }
  0xd4   :  { %266 = vmatpush3.msra.mxu1 %v144_v27 }
  0xd5   :  { %267 = vmatprep.subr.mxu1 %v277_v0 }
  0xd6   :  { %268 = vmatpush3.msra.mxu1 %v143_v28 }
  0xd7   :  { %270 = vmatmul.mubr.msk.f32.vlgmr.msra.gmra.mxu1 %vm155_vm4, %v29_v29 }
 0x197   :  { %v229_v35 = vpop.f32.mrf.mxu1 }
 0x198   :  { %v230_v36 = vadd.f32 %v229_v35, %v154_v34 }
 0x199   :  { %v271_v37 = vpop.f32.mrf.mxu1 }
 0x19a   :  { %233 = vst [vmem:[%s352_s5] sm:$0x1] %v230_v36 }

</bundles_post_ra>
